<compile_context>
chip_gen: v7x
topology: tpu7x:2x2x1
jax: 0.10.0
libtpu: 0.0.40
codegen_flags: <defaults>
</compile_context>

<pallas_src>
import functools

import numpy as np
import jax
import jax.numpy as jnp
from jax.experimental import pallas as pl
from jax.experimental.pallas import tpu as pltpu


def _relpos2d_kernel(table_t_ref, onehot_t_ref, out_ref):
    """table_t_ref:  (D, K_pad)  stacked+transposed [table_v | table_h], zero-padded.
    onehot_t_ref: (K_pad, n_pad) static 0/1 selection matrix (transposed).
    out_ref:      (D, n_pad)     lane-dense output — single fused MXU gather-add."""
    out_ref[...] = jnp.dot(
        table_t_ref[...], onehot_t_ref[...],
        preferred_element_type=jnp.float32,
        precision=jax.lax.Precision.HIGHEST,
    ).astype(out_ref.dtype)


@functools.lru_cache(maxsize=None)
def _build_onehot_t(length_q, length_k, max_rel, num_table_rows, k_pad, n_pad,
                    dtype_str):
    """Static transposed one-hot selection matrix (k_pad, n_pad), computed once
    in numpy in the table dtype.  Floor/mod semantics match torch/python since
    all dividends are non-negative.  Column r (r < LQ*LK) has a 1 at row
    fv[r] (selects table_v) and at row V + fh[r] (selects table_h)."""
    lq = length_q - 1
    lk = length_k - 1
    # Parity with PyTorch: int(length_q ** 0.5) after the -1.
    sq = int(lq ** 0.5)
    rq = np.arange(lq)
    rk = np.arange(lk)
    dv = rk[None, :] // sq - rq[:, None] // sq
    dh = rk[None, :] % sq - rq[:, None] % sq
    fv = np.clip(dv, -max_rel, max_rel) + max_rel + 1
    fh = np.clip(dh, -max_rel, max_rel) + max_rel + 1
    # F.pad(..., (1, 0, 1, 0)): first row / first column select index 0.
    fv = np.pad(fv, ((1, 0), (1, 0)))
    fh = np.pad(fh, ((1, 0), (1, 0)))
    n = length_q * length_k
    oh = np.zeros((k_pad, n_pad), dtype=np.dtype(dtype_str))
    cols = np.arange(n)
    oh[fv.reshape(-1), cols] = 1
    oh[num_table_rows + fh.reshape(-1), cols] = 1
    return oh


@functools.partial(jax.jit, static_argnums=(2, 3, 4, 5))
def relative_position_2d_super(table_v, table_h, length_q, length_k,
                               sample_head_dim, max_relative_position):
    """Pallas equivalent of RelativePosition2D_super.forward after
    set_sample_config(sample_head_dim). Returns (length_q, length_k, head_dim).

    jit + static config args => the one-hot constant is embedded in the
    executable (no per-call upload) and all pre/post-processing fuses into a
    single dispatch with the pallas_call."""
    D = sample_head_dim
    V = table_v.shape[0]                      # 2 * max_relative_position + 2
    dtype = table_v.dtype
    n = length_q * length_k
    n_pad = ((n + 127) // 128) * 128          # lane-dense output columns
    k_pad = max(128, ((2 * V + 127) // 128) * 128)   # clean 128-deep K pass

    # Stacked, transposed, zero-padded table: (D, k_pad) = [tv^T | th^T | 0].
    tv_t = table_v[:, :D].T
    th_t = table_h[:, :D].T
    table_t = jnp.concatenate([tv_t, th_t], axis=1)
    table_t = jnp.pad(table_t, ((0, 0), (0, k_pad - 2 * V)))

    onehot_t = jnp.asarray(
        _build_onehot_t(length_q, length_k, max_relative_position,
                        V, k_pad, n_pad, np.dtype(dtype).name))

    itemsize = np.dtype(dtype).itemsize
    cost = pl.CostEstimate(
        flops=2 * D * k_pad * n_pad,
        transcendentals=0,
        bytes_accessed=(D * k_pad + k_pad * n_pad + D * n_pad) * itemsize)

    out_t = pl.pallas_call(
        _relpos2d_kernel,
        out_shape=jax.ShapeDtypeStruct((D, n_pad), dtype),
        in_specs=[
            pl.BlockSpec(memory_space=pltpu.MemorySpace.VMEM),
            pl.BlockSpec(memory_space=pltpu.MemorySpace.VMEM),
        ],
        out_specs=pl.BlockSpec(memory_space=pltpu.MemorySpace.VMEM),
        cost_estimate=cost,
    )(table_t, onehot_t)

    # Un-transpose / un-pad once (fused inside the same jitted program).
    return out_t[:, :n].T.reshape(length_q, length_k, D)


def _reference(table_v, table_h, length_q, length_k, sample_head_dim, max_rel):
    """Pure-JAX port of the PyTorch forward, for correctness checking."""
    tv = table_v[:, :sample_head_dim]
    th = table_h[:, :sample_head_dim]
    lq = length_q - 1
    lk = length_k - 1
    rq = jnp.arange(lq)
    rk = jnp.arange(lk)
    sq = int(lq ** 0.5)
    dv = rk[None, :] // sq - rq[:, None] // sq
    dh = rk[None, :] % sq - rq[:, None] % sq
    fv = jnp.clip(dv, -max_rel, max_rel) + max_rel + 1
    fh = jnp.clip(dh, -max_rel, max_rel) + max_rel + 1
    fv = jnp.pad(fv, ((1, 0), (1, 0)))
    fh = jnp.pad(fh, ((1, 0), (1, 0)))
    return tv[fv] + th[fh]


if __name__ == "__main__":
    # Module config (small, consistent with a ViT-style use: 4x4 patches + cls).
    num_units = 32                # per-head dim of the embedding tables
    max_relative_position = 4     # -> table rows V = 2*4 + 2 = 10
    sample_head_dim = 32          # set_sample_config(sample_head_dim)
    length_q = 17                 # 4*4 patch tokens + 1 cls token
    length_k = 17

    V = max_relative_position * 2 + 2

    # Deterministic parameter init mimicking trunc_normal_(std=0.02).
    key = jax.random.PRNGKey(0)
    kv, kh = jax.random.split(key)
    embeddings_table_v = 0.02 * jax.random.truncated_normal(
        kv, -2.0, 2.0, (V, num_units), dtype=jnp.float32)
    embeddings_table_h = 0.02 * jax.random.truncated_normal(
        kh, -2.0, 2.0, (V, num_units), dtype=jnp.float32)

    out = relative_position_2d_super(
        embeddings_table_v, embeddings_table_h,
        length_q, length_k, sample_head_dim, max_relative_position)
    out = jax.block_until_ready(out)

    # Second call exercises the jit cache (no recompile, no one-hot re-upload).
    out2 = jax.block_until_ready(relative_position_2d_super(
        embeddings_table_v, embeddings_table_h,
        length_q, length_k, sample_head_dim, max_relative_position))

    ref = _reference(embeddings_table_v, embeddings_table_h,
                     length_q, length_k, sample_head_dim, max_relative_position)

    assert out.shape == (length_q, length_k, sample_head_dim), out.shape
    assert jnp.allclose(out, ref, atol=1e-6, rtol=1e-6), "mismatch vs reference"
    assert jnp.allclose(out2, ref, atol=1e-6, rtol=1e-6), "mismatch (cached call)"
    print("KERNEL_OK")
</pallas_src>

<mosaic_0001>
module attributes {stable_mosaic.version = 11 : i64} {
  func.func @_relpos2d_kernel(%arg0: memref<32x128xf32, #tpu.memory_space<vmem>>, %arg1: memref<128x384xf32, #tpu.memory_space<vmem>>, %arg2: memref<32x384xf32, #tpu.memory_space<vmem>>) attributes {dimension_semantics = [], scalar_prefetch = 0 : i64, scratch_operands = 0 : i64, tpu.core_type = #tpu.core_type<tc>} {
    %c0 = arith.constant 0 : index
    %c0_0 = arith.constant 0 : index
    %0 = vector.load %arg0[%c0, %c0_0] : memref<32x128xf32, #tpu.memory_space<vmem>>, vector<32x128xf32>
    %c0_1 = arith.constant 0 : index
    %c0_2 = arith.constant 0 : index
    %1 = vector.load %arg1[%c0_1, %c0_2] : memref<128x384xf32, #tpu.memory_space<vmem>>, vector<128x384xf32>
    %cst = arith.constant dense<0.000000e+00> : vector<32x384xf32>
    %2 = tpu.matmul %0, %1, %cst {dimension_numbers = #tpu.dot_dimension_numbers<[1], [0], [0], [1], [0, 0, 1, 1], [], []>, precision = #tpu.contract_precision<fp32>} : vector<32x128xf32>, vector<128x384xf32>, vector<32x384xf32> -> vector<32x384xf32>
    %c0_3 = arith.constant 0 : index
    %c0_4 = arith.constant 0 : index
    %3 = vector.load %arg2[%c0_3, %c0_4] : memref<32x384xf32, #tpu.memory_space<vmem>>, vector<32x384xf32>
    tpu.vector_store %arg2[%c0_3, %c0_4], %2 {strides = array<i32>} : memref<32x384xf32, #tpu.memory_space<vmem>>, vector<32x384xf32>,
    return
  }
}

</mosaic_0001>

<bundles_post_ra>
// kernel: relative_position_2d_super.1
= control target key start
LH: loop header
LB: loop body
LE: loop exit
PB: predicated region body
PF: predicated region fallthrough
CT: control target
= control target key end

     0   :  { %7 = vsyncpa [#allocation3], 0  ;;  %s2686_s9 = smov [#allocation2]   ;;  %s3653_s0 = inlined_call_operand.vmem [shape: f32[32,128], index: 0, kind: input, shape index: {}]   ;;  %s3654_s1 = inlined_call_operand.hbm [shape: f32[128,384], index: 1, kind: input, shape index: {}]   ;;  %s3655_s2 = inlined_call_operand.vmem [shape: f32[32,384], index: 2, kind: output, shape index: {}]  }
   0x1   :  { %s15_s10 = sshll.u32 %s2686_s9, 4  ;;  %s2662_s13 = scalar_lea.hbm %s3654_s1, 6144  ;;  %s16_s10 = int_to_ptr.vmem [resolvable:$true] %s15_s10 }
   0x2   :  { %p2663_p0 = scmp.ne.s32.totalorder %s3654_s1, %s2662_s13  ;;  %p2666_p1 = scmp.lt.u32.totalorder %s2662_s13, %s3654_s1 }
   0x4   :  { %p2668_p2 = pnand %p2666_p1, %p2663_p0 }
   0x6   :  { %2671 = shalt.err (!%p2668_p2)
}
   0x7   :  { %s2672_s18 = scalar_lea.vmem %s16_s10, 6144  ;;  %p2677_p4 = scmp.lt.s32.totalorder %s16_s10, %s16_s10 }
   0x8   :  { %p2673_p3 = scmp.ne.s32.totalorder %s16_s10, %s2672_s18  ;;  %p2678_p5 = scmp.lt.s32.totalorder %s2672_s18, %s2672_s18 }
   0xa   :  { %p2679_p6 = por %p2678_p5, %p2677_p4 }
   0xc   :  { %p2680_p7 = pnand %p2679_p6, %p2673_p3 }
   0xe   :  { %2683 = shalt.err (!%p2680_p7)
}
   0xf   :  { %s2687_s19 = smov 384   ;;  %s2688_s20 = smov 24  }
  0x10   :  { %21 = dma.hbm_to_vmem [thread:$0]  %s3654_s1, 6144, %s16_s10, [#allocation3], %s2687_s19, %s2687_s19, %s2688_s20  }
  0x11   :  { %2684 = dma.done.wait [#allocation3], 6144  }
  0x12   :  { %2685 = vsyncadd [#allocation3], 4294961152  ;;  %v3660_v0 = vmov 0.0   ;;  %v30_v1 = vld [vmem:[#allocation2 + $0x8] sm:$0xff]  ;;  %v33_v2 = vld [vmem:[#allocation2 + $0x20] sm:$0xff] }
  0x13   :  { %173 = vmatprep.mubr.f32.mxu0 %v3660_v0  ;;  %v2718_v3 = vld [vmem:[#allocation2 + $0x10] sm:$0xff]  ;;  %v77_v4 = vand.u32 4294901760, %v30_v1  ;;  %v81_v5 = vand.u32 4294901760, %v33_v2  ;;  %v2720_v6 = vld [vmem:[#allocation2 + $0x28] sm:$0xff]  ;;  %v29_v8 = vld [vmem:[#allocation2] sm:$0xff] }
  0x14   :  { %v3665_v7 = vand.u32 4294901760, %v2718_v3  ;;  %v32_v9 = vld [vmem:[#allocation2 + $0x18] sm:$0xff]  ;;  %v3664_v10 = vand.u32 4294901760, %v2720_v6  ;;  %v79_v11 = vand.u32 4294901760, %v29_v8  ;;  %v39_v14 = vld [vmem:[#allocation2 + $0x50] sm:$0xff]  ;;  %v2724_v15 = vld [vmem:[#allocation2 + $0x40] sm:$0xff] }
  0x15   :  { %v83_v12 = vand.u32 4294901760, %v32_v9  ;;  %v36_v13 = vld [vmem:[#allocation2 + $0x38] sm:$0xff]  ;;  %v2726_v16 = vpack.c.bf16 %v81_v5, %v77_v4  ;;  %v2728_v17 = vsub.f32 %v30_v1, %v77_v4  ;;  %v2730_v18 = vsub.f32 %v33_v2, %v81_v5  ;;  %v35_v21 = vld [vmem:[#allocation2 + $0x30] sm:$0xff]  ;;  %v38_v22 = vld [vmem:[#allocation2 + $0x48] sm:$0xff] }
  0x16   :  { %v85_v19 = vand.u32 4294901760, %v36_v13  ;;  %v2732_v20 = vld [vmem:[#allocation2 + $0x58] sm:$0xff]  ;;  %v2738_v23 = vpack.c.bf16 %v3664_v10, %v3665_v7  ;;  %v2742_v25 = vsub.f32 %v29_v8, %v79_v11  ;;  %v42_v27 = vld [vmem:[#allocation2 + $0x68] sm:$0xff]  ;;  %v45_v28 = vld [vmem:[#allocation2 + $0x80] sm:$0xff]  ;;  %v89_v30 = vand.u32 4294901760, %v39_v14 }
  0x17   :  { %3807 = vst [vmem:[#allocation5_spill] sm:$0xff] %v2726_v16  ;;  %v2740_v24 = vpack.c.bf16 %v83_v12, %v79_v11  ;;  %v2744_v26 = vsub.f32 %v32_v9, %v83_v12  ;;  %v2746_v29 = vld [vmem:[#allocation2 + $0x70] sm:$0xff]  ;;  %2215 = vmatprep.subr.bf16.mxu0 %v2726_v16  ;;  %v3663_v32 = vand.u32 4294901760, %v2724_v15  ;;  %v3662_v33 = vand.u32 4294901760, %v2732_v20  ;;  %v2753_v34 = vld [vmem:[#allocation2 + $0x88] sm:$0xff]  ;;  %v41_v39 = vld [vmem:[#allocation2 + $0x60] sm:$0xff] }
  0x18   :  { %3808 = vst [vmem:[#allocation6_spill] sm:$0xff] %v2738_v23  ;;  %3810 = vst [vmem:[#allocation8_spill] sm:$0xff] %v2742_v25  ;;  %v2749_v31 = vsub.f32 %v36_v13, %v85_v19  ;;  %2407 = vmatprep.subr.bf16.mxu1 %v2738_v23  ;;  %v87_v35 = vand.u32 4294901760, %v35_v21  ;;  %v91_v36 = vand.u32 4294901760, %v38_v22  ;;  %v93_v37 = vand.u32 4294901760, %v42_v27  ;;  %v44_v40 = vld [vmem:[#allocation2 + $0x78] sm:$0xff] }
  0x19   :  { %3809 = vst [vmem:[#allocation7_spill] sm:$0xff] %v2740_v24  ;;  %2217 = vmatpush1.bf16.msra.mxu0 %v2740_v24  ;;  %v97_v38 = vand.u32 4294901760, %v45_v28  ;;  %2409 = vmatpush3.bf16.msra.mxu1 %v2738_v23  ;;  %v2758_v41 = vpack.c.bf16 %v89_v30, %v85_v19  ;;  %v2760_v42 = vsub.f32 %v39_v14, %v89_v30  ;;  %v3659_v44 = vand.u32 4294901760, %v2746_v29  ;;  %v48_v45 = vld [vmem:[#allocation2 + $0x98] sm:$0xff]  ;;  %v51_v46 = vld [vmem:[#allocation2 + $0xb0] sm:$0xff]  ;;  %v2769_v47 = vld [vmem:[#allocation2 + $0xa0] sm:$0xff] }
  0x1a   :  { %v2766_v43 = vpack.c.bf16 %v3662_v33, %v3663_v32  ;;  %v2771_v48 = vpack.c.bf16 %v91_v36, %v87_v35  ;;  %v2773_v49 = vsub.f32 %v35_v21, %v87_v35  ;;  %v2775_v50 = vsub.f32 %v38_v22, %v91_v36  ;;  %v2779_v52 = vld [vmem:[#allocation2 + $0xb8] sm:$0xff]  ;;  %v47_v53 = vld [vmem:[#allocation2 + $0x90] sm:$0xff]  ;;  %v50_v62 = vld [vmem:[#allocation2 + $0xa8] sm:$0xff] }
  0x1b   :  { %3811 = vst [vmem:[#allocation9_spill] sm:$0xff] %v2758_v41  ;;  %v2777_v51 = vpack.c.bf16 %v97_v38, %v93_v37  ;;  %2219 = vmatprep.subr.bf16.mxu0 %v2758_v41  ;;  %v2783_v54 = vsub.f32 %v42_v27, %v93_v37  ;;  %v2785_v55 = vsub.f32 %v45_v28, %v97_v38  ;;  %v3658_v56 = vand.u32 4294901760, %v2753_v34  ;;  %v54_v63 = vld [vmem:[#allocation2 + $0xc8] sm:$0xff]  ;;  %v57_v8 = vld [vmem:[#allocation2 + $0xe0] sm:$0xff]  ;;  %v2801_v9 = vld [vmem:[#allocation2 + $0xd0] sm:$0xff] }
  0x1c   :  { %3812 = vst [vmem:[#allocation10_spill] sm:$0xff] %v2766_v43  ;;  %3813 = vst [vmem:[#allocation11_spill] sm:$0xff] %v2771_v48  ;;  %2411 = vmatprep.subr.bf16.mxu1 %v2766_v43  ;;  %v95_v57 = vand.u32 4294901760, %v41_v39  ;;  %v99_v58 = vand.u32 4294901760, %v44_v40  ;;  %v101_v59 = vand.u32 4294901760, %v48_v45  ;;  %v105_v60 = vand.u32 4294901760, %v51_v46 }
  0x1d   :  { %3814 = vst [vmem:[#allocation12_spill] sm:$0xff] %v2777_v51  ;;  %2221 = vmatpush1.bf16.msra.mxu0 %v2771_v48  ;;  %v3657_v61 = vand.u32 4294901760, %v2769_v47  ;;  %2413 = vmatpush3.bf16.msra.mxu1 %v2766_v43  ;;  %v2796_v1 = vpack.c.bf16 %v3658_v56, %v3659_v44  ;;  %v3656_v4 = vand.u32 4294901760, %v2779_v52  ;;  %v103_v5 = vand.u32 4294901760, %v47_v53  ;;  %v2803_v11 = vld [vmem:[#allocation2 + $0xe8] sm:$0xff]  ;;  %v53_v21 = vld [vmem:[#allocation2 + $0xc0] sm:$0xff] }
  0x1e   :  { %2223 = vmatprep.subr.bf16.mxu0 %v2777_v51  ;;  %v2798_v2 = vsub.f32 %v41_v39, %v95_v57  ;;  %v2805_v12 = vpack.c.bf16 %v99_v58, %v95_v57  ;;  %v2807_v13 = vsub.f32 %v44_v40, %v99_v58  ;;  %v2809_v14 = vpack.c.bf16 %v105_v60, %v101_v59  ;;  %v56_v22 = vld [vmem:[#allocation2 + $0xd8] sm:$0xff]  ;;  %v69_v0 = vld [vmem:[#allocation2 + $0x140] sm:$0xff]  ;;  %v75_v51 = vld [vmem:[#allocation2 + $0x170] sm:$0xff] }
  0x1f   :  { %3815 = vst [vmem:[#allocation13_spill] sm:$0xff] %v2796_v1  ;;  %v2811_v19 = vsub.f32 %v48_v45, %v101_v59  ;;  %2415 = vmatprep.subr.bf16.mxu1 %v2796_v1  ;;  %v2814_v27 = vsub.f32 %v51_v46, %v105_v60  ;;  %v2820_v28 = vpack.c.bf16 %v3656_v4, %v3657_v61  ;;  %v107_v30 = vand.u32 4294901760, %v50_v62  ;;  %v60_v40 = vld [vmem:[#allocation2 + $0xf8] sm:$0xff]  ;;  %v63_v45 = vld [vmem:[#allocation2 + $0x110] sm:$0xff]  ;;  %v2833_v59 = vld [vmem:[#allocation2 + $0x100] sm:$0xff] }
  0x20   :  { %3816 = vst [vmem:[#allocation14_spill] sm:$0xff] %v2805_v12  ;;  %3817 = vst [vmem:[#allocation15_spill] sm:$0xff] %v2809_v14  ;;  %v2822_v35 = vsub.f32 %v47_v53, %v103_v5  ;;  %v109_v36 = vand.u32 4294901760, %v54_v63  ;;  %v113_v37 = vand.u32 4294901760, %v57_v8  ;;  %v3667_v38 = vand.u32 4294901760, %v2801_v9  ;;  %v2835_v60 = vld [vmem:[#allocation2 + $0x118] sm:$0xff] }
  0x21   :  { %3818 = vst [vmem:[#allocation16_spill] sm:$0xff] %v2820_v28  ;;  %2225 = vmatpush1.bf16.msra.mxu0 %v2805_v12  ;;  %v3666_v39 = vand.u32 4294901760, %v2803_v11  ;;  %2417 = vmatpush3.bf16.msra.mxu1 %v2796_v1  ;;  %v2829_v46 = vpack.c.bf16 %v107_v30, %v103_v5  ;;  %v2831_v57 = vsub.f32 %v50_v62, %v107_v30  ;;  %v111_v53 = vand.u32 4294901760, %v53_v21  ;;  %v59_v4 = vld [vmem:[#allocation2 + $0xf0] sm:$0xff]  ;;  %v62_v5 = vld [vmem:[#allocation2 + $0x108] sm:$0xff]  ;;  %v72_v1 = vld [vmem:[#allocation2 + $0x158] sm:$0xff] }
  0x22   :  { %2227 = vmatprep.subr.bf16.mxu0 %v2809_v14  ;;  %v115_v58 = vand.u32 4294901760, %v56_v22  ;;  %2419 = vmatprep.subr.bf16.mxu1 %v2820_v28  ;;  %v2838_v61 = vpack.c.bf16 %v113_v37, %v109_v36  ;;  %v2840_v56 = vsub.f32 %v54_v63, %v109_v36  ;;  %v2842_v44 = vsub.f32 %v57_v8, %v113_v37  ;;  %v66_v30 = vld [vmem:[#allocation2 + $0x128] sm:$0xff]  ;;  %v68_v14 = vld [vmem:[#allocation2 + $0x138] sm:$0xff]  ;;  %v2880_v48 = vld [vmem:[#allocation2 + $0x160] sm:$0xff] }
  0x23   :  { %3819 = vst [vmem:[#allocation17_spill] sm:$0xff] %v2829_v46  ;;  %v2848_v62 = vpack.c.bf16 %v3666_v39, %v3667_v38  ;;  %v2852_v32 = vsub.f32 %v53_v21, %v111_v53  ;;  %v117_v7 = vand.u32 4294901760, %v60_v40  ;;  %v121_v63 = vand.u32 4294901760, %v63_v45  ;;  %v2859_v39 = vld [vmem:[#allocation2 + $0x130] sm:$0xff] }
  0x24   :  { %3820 = vst [vmem:[#allocation18_spill] sm:$0xff] %v2838_v61  ;;  %v2850_v33 = vpack.c.bf16 %v115_v58, %v111_v53  ;;  %v2854_v10 = vsub.f32 %v56_v22, %v115_v58  ;;  %v119_v37 = vand.u32 4294901760, %v59_v4  ;;  %3823 = vst [vmem:[#allocation21_spill] sm:$0xff] %v2859_v39  ;;  %v123_v21 = vand.u32 4294901760, %v62_v5  ;;  %v2865_v58 = vld [vmem:[#allocation2 + $0x148] sm:$0xff]  ;;  %v71_v24 = vld [vmem:[#allocation2 + $0x150] sm:$0xff] }
  0x25   :  { %3821 = vst [vmem:[#allocation19_spill] sm:$0xff] %v2848_v62  ;;  %2229 = vmatpush1.bf16.msra.mxu0 %v2829_v46  ;;  %2421 = vmatpush3.bf16.msra.mxu1 %v2820_v28  ;;  %v2863_v38 = vsub.f32 %v60_v40, %v117_v7  ;;  %v125_v22 = vand.u32 4294901760, %v66_v30  ;;  %v129_v53 = vand.u32 4294901760, %v69_v0  ;;  %3824 = vst [vmem:[#allocation22_spill] sm:$0xff] %v2865_v58  ;;  %v65_v46 = vld [vmem:[#allocation2 + $0x120] sm:$0xff]  ;;  %v3826_v12 = vand.u32 4294901760, %v2833_v59 }
  0x26   :  { %3822 = vst [vmem:[#allocation20_spill] sm:$0xff] %v2850_v33  ;;  %2231 = vmatprep.subr.bf16.mxu0 %v2838_v61  ;;  %2423 = vmatprep.subr.bf16.mxu1 %v2848_v62  ;;  %v2868_v8 = vpack.c.bf16 %v121_v63, %v117_v7  ;;  %v2870_v36 = vsub.f32 %v63_v45, %v121_v63  ;;  %v3827_v28 = vand.u32 4294901760, %v2835_v60  ;;  %v2890_v63 = vld [vmem:[#allocation2 + $0x178] sm:$0xff]  ;;  %v127_v23 = vand.u32 4294901760, %v65_v46 }
  0x27   :  { %v2878_v40 = vsub.f32 %v59_v4, %v119_v37  ;;  %v2882_v43 = vpack.c.bf16 %v123_v21, %v119_v37  ;;  %v2884_v41 = vsub.f32 %v62_v5, %v123_v21  ;;  %v2886_v7 = vpack.c.bf16 %v129_v53, %v125_v22 }
  0x28   :  { %3825 = vst [vmem:[#allocation23_spill] sm:$0xff] %v2868_v8  ;;  %v2876_v61 = vpack.c.bf16 %v3827_v28, %v3826_v12  ;;  %v2888_v45 = vsub.f32 %v66_v30, %v125_v22  ;;  %v2893_v12 = vsub.f32 %v69_v0, %v129_v53  ;;  %v3704_v4 = vand.u32 4294901760, %v2859_v39  ;;  %v74_v22 = vld [vmem:[#allocation2 + $0x168] sm:$0xff] }
  0x29   :  { %3829 = vst [vmem:[#allocation25_spill] sm:$0xff] %v2878_v40  ;;  %3830 = vst [vmem:[#allocation26_spill] sm:$0xff] %v2882_v43  ;;  %2233 = vmatpush1.bf16.msra.mxu0 %v2850_v33  ;;  %v3703_v28 = vand.u32 4294901760, %v2865_v58  ;;  %2425 = vmatpush3.bf16.msra.mxu1 %v2848_v62  ;;  %v131_v5 = vand.u32 4294901760, %v68_v14  ;;  %v133_v37 = vand.u32 4294901760, %v72_v1  ;;  %v137_v30 = vand.u32 4294901760, %v75_v51 }
  0x2a   :  { %3828 = vst [vmem:[#allocation24_spill] sm:$0xff] %v2876_v61  ;;  %3831 = vst [vmem:[#allocation27_spill] sm:$0xff] %v2884_v41  ;;  %2235 = vmatprep.subr.bf16.mxu0 %v2868_v8  ;;  %2427 = vmatprep.subr.bf16.mxu1 %v2876_v61  ;;  %v2907_v53 = vsub.f32 %v65_v46, %v127_v23  ;;  %v3708_v33 = vand.u32 4294901760, %v2890_v63  ;;  %v135_v62 = vand.u32 4294901760, %v71_v24  ;;  %v25_v8 = vld [vmem:[%s3653_s0] sm:$0xff]  ;;  %v3842_v46 = vand.u32 4294901760, %v2880_v48 }
  0x2b   :  { %3832 = vst [vmem:[#allocation28_spill] sm:$0xff] %v2886_v7  ;;  %3833 = vst [vmem:[#allocation29_spill] sm:$0xff] %v2888_v45  ;;  %v2905_v0 = vpack.c.bf16 %v3703_v28, %v3704_v4  ;;  %v2913_v16 = vpack.c.bf16 %v131_v5, %v127_v23  ;;  %v2915_v21 = vsub.f32 %v68_v14, %v131_v5  ;;  %v3711_v23 = vand.u32 4294901760, %v2728_v17 }
  0x2c   :  { %3834 = vst [vmem:[#allocation30_spill] sm:$0xff] %v2893_v12  ;;  %3836 = vst [vmem:[#allocation32_spill] sm:$0xff] %v2907_v53  ;;  %v2917_v12 = vpack.c.bf16 %v137_v30, %v133_v37  ;;  %v2919_v39 = vsub.f32 %v72_v1, %v133_v37  ;;  %v2922_v28 = vsub.f32 %v75_v51, %v137_v30  ;;  %v139_v53 = vand.u32 4294901760, %v74_v22 }
  0x2d   :  { %3835 = vst [vmem:[#allocation31_spill] sm:$0xff] %v2905_v0  ;;  %3837 = vst [vmem:[#allocation33_spill] sm:$0xff] %v2913_v16  ;;  %2237 = vmatpush1.bf16.msra.mxu0 %v2882_v43  ;;  %v2928_v4 = vpack.c.bf16 %v3708_v33, %v3842_v46  ;;  %v2930_v58 = vsub.f32 %v71_v24, %v135_v62  ;;  %2429 = vmatpush3.bf16.msra.mxu1 %v2876_v61  ;;  %v2936_v14 = vand.u32 4294901760, %v25_v8  ;;  %v26_v24 = vld [vmem:[%s3653_s0 + $0x8] sm:$0xff] }
  0x2e   :  { %3838 = vst [vmem:[#allocation34_spill] sm:$0xff] %v2915_v21  ;;  %3839 = vst [vmem:[#allocation35_spill] sm:$0xff] %v2917_v12  ;;  %2239 = vmatprep.subr.bf16.mxu0 %v2886_v7  ;;  %v3846_v51 = vand.u32 4294901760, %v2718_v3  ;;  %2431 = vmatprep.subr.bf16.mxu1 %v2905_v0  ;;  %v2947_v37 = vpack.c.bf16 %v139_v53, %v135_v62  ;;  %v2949_v30 = vsub.f32 %v74_v22, %v139_v53 }
  0x2f   :  { %3840 = vst [vmem:[#allocation36_spill] sm:$0xff] %v2919_v39  ;;  %3841 = vst [vmem:[#allocation37_spill] sm:$0xff] %v2922_v28  ;;  %v3850_v46 = vand.u32 4294901760, %v2720_v6  ;;  %v3714_v1 = vand.u32 4294901760, %v2742_v25  ;;  %v2964_v62 = vsub.f32 %v25_v8, %v2936_v14 }
  0x30   :  { %3843 = vst [vmem:[#allocation38_spill] sm:$0xff] %v2928_v4  ;;  %3844 = vst [vmem:[#allocation39_spill] sm:$0xff] %v2930_v58  ;;  %v2941_v5 = vsub.f32 %v2718_v3, %v3846_v51  ;;  %v221_v3 = vsub.f32 %v2728_v17, %v3711_v23  ;;  %v3851_v51 = vand.u32 4294901760, %v2730_v18  ;;  %v2973_v23 = vand.u32 4294901760, %v26_v24 }
  0x31   :  { %3845 = vst [vmem:[#allocation40_spill] sm:$0xff] %v2936_v14  ;;  %3848 = vst [vmem:[#allocation42_spill] sm:$0xff] %v2947_v37  ;;  %v2954_v33 = vsub.f32 %v2720_v6, %v3850_v46  ;;  %2241 = vmatpush1.bf16.msra.mxu0 %v2913_v16  ;;  %v227_v53 = vsub.f32 %v2742_v25, %v3714_v1  ;;  %2433 = vmatpush3.bf16.msra.mxu1 %v2905_v0  ;;  %v2978_v22 = vand.u32 4294901760, %v2964_v62 }
  0x32   :  { %3847 = vst [vmem:[#allocation41_spill] sm:$0xff] %v2941_v5  ;;  %3849 = vst [vmem:[#allocation43_spill] sm:$0xff] %v2949_v30  ;;  %v233_v7 = vsub.f32 %v2730_v18, %v3851_v51  ;;  %2243 = vmatprep.subr.bf16.mxu0 %v2917_v12  ;;  %v222_v8 = vand.u32 4294901760, %v221_v3  ;;  %v3855_v16 = vand.u32 4294901760, %v2941_v5  ;;  %2435 = vmatprep.subr.bf16.mxu1 %v2928_v4  ;;  %v3857_v0 = vand.u32 4294901760, %v2744_v26 }
  0x33   :  { %3852 = vst [vmem:[#allocation44_spill] sm:$0xff] %v2964_v62  ;;  %3853 = vst [vmem:[#allocation45_spill] sm:$0xff] %v2973_v23  ;;  %v3856_v1 = vand.u32 4294901760, %v2954_v33  ;;  %v228_v43 = vand.u32 4294901760, %v227_v53  ;;  %v177_v61 = vsub.f32 %v2964_v62, %v2978_v22 }
  0x34   :  { %v234_v51 = vand.u32 4294901760, %v233_v7  ;;  %3854 = vst [vmem:[#allocation46_spill] sm:$0xff] %v2978_v22  ;;  %v1204_v6 = vsub.f32 %v2941_v5, %v3855_v16  ;;  %v239_v12 = vsub.f32 %v2744_v26, %v3857_v0  ;;  %v2991_v7 = vsub.f32 %v26_v24, %v2973_v23 }
  0x35   :  { %v1211_v46 = vsub.f32 %v2954_v33, %v3856_v1  ;;  %v3731_v16 = vand.u32 4294901760, %v2749_v31  ;;  %2245 = vmatpush1.bf16.msra.mxu0 %v2947_v37  ;;  %2437 = vmatpush3.bf16.msra.mxu1 %v2928_v4  ;;  %v178_v0 = vand.u32 4294901760, %v177_v61  ;;  %v3862_v61 = vand.u32 4294901760, %v2760_v42 }
  0x36   :  { %3858 = vst [vmem:[#allocation47_spill] sm:$0xff] %v2991_v7  ;;  %v2246_v3 = vpack.c.bf16 %v234_v51, %v222_v8  ;;  %v1205_v14 = vand.u32 4294901760, %v1204_v6  ;;  %v240_v5 = vand.u32 4294901760, %v239_v12  ;;  %v2998_v1 = vand.u32 4294901760, %v2991_v7 }
  0x37   :  { %v1212_v25 = vand.u32 4294901760, %v1211_v46  ;;  %v245_v24 = vsub.f32 %v2749_v31, %v3731_v16  ;;  %v3860_v6 = vand.u32 4294901760, %v2724_v15  ;;  %v3861_v12 = vand.u32 4294901760, %v2732_v20  ;;  %2018 = vmatprep.mubr.f32.mxu1 %v178_v0 }
  0x38   :  { %3859 = vst [vmem:[#allocation48_spill] sm:$0xff] %v2998_v1  ;;  %2247 = vmatprep.subr.bf16.mxu0 %v2246_v3  ;;  %v2248_v53 = vpack.c.bf16 %v240_v5, %v228_v43  ;;  %v188_v3 = vsub.f32 %v2991_v7, %v2998_v1  ;;  %v257_v37 = vsub.f32 %v2760_v42, %v3862_v61  ;;  %v3736_v4 = vand.u32 4294901760, %v2773_v49 }
  0x39   :  { %v3008_v8 = vsub.f32 %v2724_v15, %v3860_v6  ;;  %v3013_v46 = vsub.f32 %v2732_v20, %v3861_v12  ;;  %v2438_v51 = vpack.c.bf16 %v1212_v25, %v1205_v14  ;;  %179 = vmatmul.mubr.f32.vlgmr.msra.gmra.mrb[0].mxu0 %v178_v0  ;;  %v246_v16 = vand.u32 4294901760, %v245_v24 }
  0x3a   :  { %2249 = vmatpush1.bf16.msra.mxu0 %v2248_v53  ;;  %v189_v20 = vand.u32 4294901760, %v188_v3  ;;  %v258_v25 = vand.u32 4294901760, %v257_v37  ;;  %v3741_v43 = vand.u32 4294901760, %v2775_v50  ;;  %v3744_v14 = vand.u32 4294901760, %v2783_v54 }
  0x3b   :  { %v3735_v15 = vand.u32 4294901760, %v3008_v8  ;;  %v3734_v6 = vand.u32 4294901760, %v3013_v46  ;;  %2439 = vmatprep.subr.bf16.mxu1 %v2438_v51  ;;  %v251_v24 = vsub.f32 %v2773_v49, %v3736_v4  ;;  %v3863_v12 = vmov 0.0  }
  0x3c   :  { %184 = vmatprep.mubr.f32.mxu0 %v3863_v12  ;;  %2019 = vmatmul.mubr.f32.vlgmr.msra.gmra.mrb[0].mxu1 %v189_v20  ;;  %v2250_v37 = vpack.c.bf16 %v258_v25, %v246_v16  ;;  %v263_v3 = vsub.f32 %v2775_v50, %v3741_v43  ;;  %v269_v61 = vsub.f32 %v2783_v54, %v3744_v14  ;;  %v3865_v22 = vand.u32 4294901760, %v2785_v55 }
  0x3d   :  { %v1218_v5 = vsub.f32 %v3008_v8, %v3735_v15  ;;  %v1225_v0 = vsub.f32 %v3013_v46, %v3734_v6  ;;  %v3864_v6 = vand.u32 4294901760, %v2746_v29  ;;  %2441 = vmatpush3.bf16.msra.mxu1 %v2438_v51  ;;  %v252_v1 = vand.u32 4294901760, %v251_v24  ;;  %190 = vmatmul.mubr.f32.gmra.mrb[2].mxu0 %v189_v20 }
  0x3e   :  { %v281_v16 = vsub.f32 %v2785_v55, %v3865_v22  ;;  %2251 = vmatprep.subr.bf16.mxu0 %v2250_v37  ;;  %v264_v25 = vand.u32 4294901760, %v263_v3  ;;  %v270_v43 = vand.u32 4294901760, %v269_v61  ;;  %v3866_v14 = vand.u32 4294901760, %v2753_v34  ;;  %195 = vmatprep.mubr.f32.mxu0 %v3863_v12 }
  0x3f   :  { %v3045_v15 = vsub.f32 %v2746_v29, %v3864_v6  ;;  %v1219_v4 = vand.u32 4294901760, %v1218_v5  ;;  %v1226_v53 = vand.u32 4294901760, %v1225_v0  ;;  %v3749_v6 = vand.u32 4294901760, %v2798_v2 }
  0x40   :  { %v3054_v62 = vsub.f32 %v2753_v34, %v3866_v14  ;;  %v282_v51 = vand.u32 4294901760, %v281_v16  ;;  %v3747_v5 = vand.u32 4294901760, %v2807_v13  ;;  %v2252_v22 = vpack.c.bf16 %v264_v25, %v252_v1 }
  0x41   :  { %v3767_v7 = vand.u32 4294901760, %v3045_v15  ;;  %v2442_v29 = vpack.c.bf16 %v1226_v53, %v1219_v4  ;;  %v3748_v24 = vand.u32 4294901760, %v2811_v19  ;;  %v275_v4 = vsub.f32 %v2798_v2, %v3749_v6 }
  0x42   :  { %v3766_v0 = vand.u32 4294901760, %v3054_v62  ;;  %v2254_v34 = vpack.c.bf16 %v282_v51, %v270_v43  ;;  %v287_v14 = vsub.f32 %v2807_v13, %v3747_v5  ;;  %v3750_v1 = vand.u32 4294901760, %v2814_v27  ;;  %2253 = vmatpush1.bf16.msra.mxu0 %v2252_v22 }
  0x43   :  { %v1232_v20 = vsub.f32 %v3045_v15, %v3767_v7  ;;  %2443 = vmatprep.subr.bf16.mxu1 %v2442_v29  ;;  %v293_v43 = vsub.f32 %v2811_v19, %v3748_v24  ;;  %v3867_v3 = vand.u32 4294901760, %v2769_v47  ;;  %v276_v16 = vand.u32 4294901760, %v275_v4 }
  0x44   :  { %2445 = vmatpush3.bf16.msra.mxu1 %v2442_v29  ;;  %v1239_v37 = vsub.f32 %v3054_v62, %v3766_v0  ;;  %2255 = vmatprep.subr.bf16.mxu0 %v2254_v34  ;;  %v288_v25 = vand.u32 4294901760, %v287_v14  ;;  %v305_v29 = vsub.f32 %v2814_v27, %v3750_v1  ;;  %v3868_v51 = vand.u32 4294901760, %v2779_v52 }
  0x45   :  { %v1233_v53 = vand.u32 4294901760, %v1232_v20  ;;  %v3080_v61 = vsub.f32 %v2769_v47, %v3867_v3  ;;  %v294_v5 = vand.u32 4294901760, %v293_v43  ;;  %v3751_v6 = vand.u32 4294901760, %v2822_v35 }
  0x46   :  { %v3088_v22 = vsub.f32 %v2779_v52, %v3868_v51  ;;  %v1240_v20 = vand.u32 4294901760, %v1239_v37  ;;  %v2256_v47 = vpack.c.bf16 %v288_v25, %v276_v16  ;;  %v306_v3 = vand.u32 4294901760, %v305_v29 }
  0x47   :  { %v3755_v24 = vand.u32 4294901760, %v3080_v61  ;;  %v3752_v4 = vand.u32 4294901760, %v2831_v57  ;;  %v299_v52 = vsub.f32 %v2822_v35, %v3751_v6  ;;  %v3754_v37 = vand.u32 4294901760, %v2840_v56 }
  0x48   :  { %v3753_v34 = vand.u32 4294901760, %v3088_v22  ;;  %v2446_v14 = vpack.c.bf16 %v1240_v20, %v1233_v53  ;;  %2257 = vmatpush1.bf16.msra.mxu0 %v2256_v47  ;;  %v2258_v43 = vpack.c.bf16 %v306_v3, %v294_v5  ;;  %v3760_v25 = vand.u32 4294901760, %v2842_v44 }
  0x49   :  { %v1246_v1 = vsub.f32 %v3080_v61, %v3755_v24  ;;  %v311_v53 = vsub.f32 %v2831_v57, %v3752_v4  ;;  %v300_v51 = vand.u32 4294901760, %v299_v52  ;;  %v317_v20 = vsub.f32 %v2840_v56, %v3754_v37 }
  0x4a   :  { %v1253_v16 = vsub.f32 %v3088_v22, %v3753_v34  ;;  %2447 = vmatprep.subr.bf16.mxu1 %v2446_v14  ;;  %v3869_v47 = vand.u32 4294901760, %v2801_v9  ;;  %2259 = vmatprep.subr.bf16.mxu0 %v2258_v43  ;;  %v329_v4 = vsub.f32 %v2842_v44, %v3760_v25  ;;  %v3756_v24 = vand.u32 4294901760, %v2852_v32 }
  0x4b   :  { %v1247_v29 = vand.u32 4294901760, %v1246_v1  ;;  %2449 = vmatpush3.bf16.msra.mxu1 %v2446_v14  ;;  %v312_v6 = vand.u32 4294901760, %v311_v53  ;;  %v3870_v1 = vand.u32 4294901760, %v2803_v11  ;;  %v318_v34 = vand.u32 4294901760, %v317_v20 }
  0x4c   :  { %v3114_v5 = vsub.f32 %v2801_v9, %v3869_v47  ;;  %v1254_v3 = vand.u32 4294901760, %v1253_v16  ;;  %v3758_v9 = vand.u32 4294901760, %v2854_v10  ;;  %v330_v16 = vand.u32 4294901760, %v329_v4 }
  0x4d   :  { %v3122_v52 = vsub.f32 %v2803_v11, %v3870_v1  ;;  %v2260_v43 = vpack.c.bf16 %v312_v6, %v300_v51  ;;  %v323_v11 = vsub.f32 %v2852_v32, %v3756_v24  ;;  %v3764_v1 = vand.u32 4294901760, %v2863_v38 }
  0x4e   :  { %v3757_v37 = vand.u32 4294901760, %v3114_v5  ;;  %v2450_v14 = vpack.c.bf16 %v1254_v3, %v1247_v29  ;;  %v335_v20 = vsub.f32 %v2854_v10, %v3758_v9  ;;  %v2262_v6 = vpack.c.bf16 %v330_v16, %v318_v34 }
  0x4f   :  { %v3759_v53 = vand.u32 4294901760, %v3122_v52  ;;  %2261 = vmatpush1.bf16.msra.mxu0 %v2260_v43  ;;  %v3761_v29 = vand.u32 4294901760, %v2870_v36  ;;  %v3871_v51 = vand.u32 4294901760, %v2833_v59  ;;  %v341_v43 = vsub.f32 %v2863_v38, %v3764_v1 }
  0x50   :  { %v1260_v47 = vsub.f32 %v3114_v5, %v3757_v37  ;;  %2451 = vmatprep.subr.bf16.mxu1 %v2450_v14  ;;  %v324_v37 = vand.u32 4294901760, %v323_v11  ;;  %v336_v9 = vand.u32 4294901760, %v335_v20  ;;  %2263 = vmatprep.subr.bf16.mxu0 %v2262_v6  ;;  %v3872_v25 = vand.u32 4294901760, %v2835_v60 }
  0x51   :  { %v1267_v4 = vsub.f32 %v3122_v52, %v3759_v53  ;;  %v3145_v3 = vsub.f32 %v2833_v59, %v3871_v51  ;;  %2453 = vmatpush3.bf16.msra.mxu1 %v2450_v14  ;;  %v353_v16 = vsub.f32 %v2870_v36, %v3761_v29  ;;  %v3762_v11 = vand.u32 4294901760, %v2878_v40 }
  0x52   :  { %v1261_v24 = vand.u32 4294901760, %v1260_v47  ;;  %v3157_v59 = vsub.f32 %v2835_v60, %v3872_v25  ;;  %v2264_v14 = vpack.c.bf16 %v336_v9, %v324_v37  ;;  %v342_v47 = vand.u32 4294901760, %v341_v43  ;;  %v3873_v9 = vld [vmem:[#allocation30_spill] sm:$0xff]  ;;  %v27_v43 = vld [vmem:[%s3653_s0 + $0x10] sm:$0xff] }
  0x53   :  { %v1268_v34 = vand.u32 4294901760, %v1267_v4  ;;  %v3763_v53 = vand.u32 4294901760, %v3145_v3  ;;  %v3765_v20 = vand.u32 4294901760, %v2884_v41  ;;  %v354_v6 = vand.u32 4294901760, %v353_v16 }
  0x54   :  { %v3768_v29 = vand.u32 4294901760, %v3157_v59  ;;  %2265 = vmatpush1.bf16.msra.mxu0 %v2264_v14  ;;  %v347_v60 = vsub.f32 %v2878_v40, %v3762_v11  ;;  %v3773_v25 = vand.u32 4294901760, %v2888_v45  ;;  %v3874_v11 = vld [vmem:[#allocation21_spill] sm:$0xff]  ;;  %v3878_v40 = vld [vmem:[#allocation32_spill] sm:$0xff] }
  0x55   :  { %v2454_v51 = vpack.c.bf16 %v1268_v34, %v1261_v24  ;;  %v1274_v4 = vsub.f32 %v3145_v3, %v3763_v53  ;;  %v359_v37 = vsub.f32 %v2884_v41, %v3765_v20  ;;  %v3776_v24 = vand.u32 4294901760, %v3873_v9 }
  0x56   :  { %v2266_v34 = vpack.c.bf16 %v354_v6, %v342_v47  ;;  %v1281_v14 = vsub.f32 %v3157_v59, %v3768_v29  ;;  %v3875_v53 = vand.u32 4294901760, %v3874_v11  ;;  %v348_v20 = vand.u32 4294901760, %v347_v60  ;;  %v3876_v29 = vld [vmem:[#allocation22_spill] sm:$0xff] }
  0x57   :  { %2455 = vmatprep.subr.bf16.mxu1 %v2454_v51  ;;  %v1275_v16 = vand.u32 4294901760, %v1274_v4  ;;  %v360_v0 = vand.u32 4294901760, %v359_v37  ;;  %v365_v7 = vsub.f32 %v2888_v45, %v3773_v25  ;;  %v377_v47 = vsub.f32 %v3873_v9, %v3776_v24 }
  0x58   :  { %v3182_v1 = vsub.f32 %v3874_v11, %v3875_v53  ;;  %2457 = vmatpush3.bf16.msra.mxu1 %v2454_v51  ;;  %2267 = vmatprep.subr.bf16.mxu0 %v2266_v34  ;;  %v1282_v6 = vand.u32 4294901760, %v1281_v14  ;;  %v3877_v41 = vand.u32 4294901760, %v3876_v29  ;;  %v3196_v11 = vand.u32 4294901760, %v27_v43 }
  0x59   :  { %v2268_v51 = vpack.c.bf16 %v360_v0, %v348_v20  ;;  %v366_v60 = vand.u32 4294901760, %v365_v7  ;;  %v378_v37 = vand.u32 4294901760, %v377_v47  ;;  %v3777_v25 = vand.u32 4294901760, %v3878_v40 }
  0x5a   :  { %v3779_v4 = vand.u32 4294901760, %v3182_v1  ;;  %v3194_v53 = vsub.f32 %v3876_v29, %v3877_v41  ;;  %v2458_v45 = vpack.c.bf16 %v1282_v6, %v1275_v16  ;;  %v3204_v24 = vsub.f32 %v27_v43, %v3196_v11  ;;  %v28_v6 = vld [vmem:[%s3653_s0 + $0x18] sm:$0xff] }
  0x5b   :  { %2269 = vmatpush1.bf16.msra.mxu0 %v2268_v51  ;;  %v2270_v41 = vpack.c.bf16 %v378_v37, %v366_v60  ;;  %v371_v0 = vsub.f32 %v3878_v40, %v3777_v25  ;;  %v3780_v7 = vand.u32 4294901760, %v2915_v21  ;;  %v3781_v29 = vand.u32 4294901760, %v2919_v39 }
  0x5c   :  { %v1288_v34 = vsub.f32 %v3182_v1, %v3779_v4  ;;  %v3778_v14 = vand.u32 4294901760, %v3194_v53  ;;  %3879 = vst [vmem:[#allocation30_spill] sm:$0xff] %v3204_v24  ;;  %2459 = vmatprep.subr.bf16.mxu1 %v2458_v45  ;;  %v3215_v47 = vand.u32 4294901760, %v3204_v24  ;;  %v3790_v43 = vand.u32 4294901760, %v2922_v28 }
  0x5d   :  { %2461 = vmatpush3.bf16.msra.mxu1 %v2458_v45  ;;  %2271 = vmatprep.subr.bf16.mxu0 %v2270_v41  ;;  %v372_v51 = vand.u32 4294901760, %v371_v0  ;;  %v383_v60 = vsub.f32 %v2915_v21, %v3780_v7  ;;  %v389_v37 = vsub.f32 %v2919_v39, %v3781_v29  ;;  %v3882_v41 = vand.u32 4294901760, %v2890_v63 }
  0x5e   :  { %v1289_v20 = vand.u32 4294901760, %v1288_v34  ;;  %v1295_v16 = vsub.f32 %v3194_v53, %v3778_v14  ;;  %3880 = vst [vmem:[#allocation21_spill] sm:$0xff] %v3215_v47  ;;  %v3881_v34 = vand.u32 4294901760, %v2880_v48  ;;  %v199_v4 = vsub.f32 %v3204_v24, %v3215_v47 }
  0x5f   :  { %v401_v45 = vsub.f32 %v2922_v28, %v3790_v43  ;;  %v3240_v0 = vsub.f32 %v2890_v63, %v3882_v41  ;;  %v384_v7 = vand.u32 4294901760, %v383_v60  ;;  %v390_v29 = vand.u32 4294901760, %v389_v37 }
  0x60   :  { %v3230_v25 = vsub.f32 %v2880_v48, %v3881_v34  ;;  %v1296_v14 = vand.u32 4294901760, %v1295_v16  ;;  %v3243_v21 = vand.u32 4294901760, %v28_v6  ;;  %v200_v16 = vand.u32 4294901760, %v199_v4 }
  0x61   :  { %v402_v34 = vand.u32 4294901760, %v401_v45  ;;  %v3795_v47 = vand.u32 4294901760, %v3240_v0  ;;  %v2272_v24 = vpack.c.bf16 %v384_v7, %v372_v51  ;;  %v3793_v63 = vand.u32 4294901760, %v2930_v58 }
  0x62   :  { %v3796_v39 = vand.u32 4294901760, %v3230_v25  ;;  %v2462_v48 = vpack.c.bf16 %v1296_v14, %v1289_v20  ;;  %v3250_v28 = vsub.f32 %v28_v6, %v3243_v21  ;;  %201 = vmatmul.mubr.f32.gmra.mrb[4].mxu0 %v200_v16  ;;  %v3794_v14 = vand.u32 4294901760, %v2949_v30  ;;  %2021 = vmatprep.mubr.f32.mxu1 %v200_v16 }
  0x63   :  { %v2274_v60 = vpack.c.bf16 %v402_v34, %v390_v29  ;;  %v1309_v4 = vsub.f32 %v3240_v0, %v3795_v47  ;;  %2273 = vmatpush1.bf16.msra.mxu0 %v2272_v24  ;;  %v395_v6 = vsub.f32 %v2930_v58, %v3793_v63  ;;  %206 = vmatprep.mubr.f32.mxu0 %v3863_v12  ;;  %v3885_v63 = vld [vmem:[#allocation41_spill] sm:$0xff] }
  0x64   :  { %v1302_v43 = vsub.f32 %v3230_v25, %v3796_v39  ;;  %3883 = vst [vmem:[#allocation22_spill] sm:$0xff] %v3250_v28  ;;  %2463 = vmatprep.subr.bf16.mxu1 %v2462_v48  ;;  %v3258_v20 = vand.u32 4294901760, %v3250_v28  ;;  %v407_v51 = vsub.f32 %v2949_v30, %v3794_v14  ;;  %v2282_v14 = vpack.c.bf16 %v2760_v42, %v2749_v31 }
  0x65   :  { %2465 = vmatpush3.bf16.msra.mxu1 %v2462_v48  ;;  %2275 = vmatprep.subr.bf16.mxu0 %v2274_v60  ;;  %v1310_v29 = vand.u32 4294901760, %v1309_v4  ;;  %v2278_v48 = vpack.c.bf16 %v2730_v18, %v2728_v17  ;;  %v2470_v60 = vpack.c.bf16 %v2954_v33, %v3885_v63  ;;  %v3886_v4 = vld [vmem:[#allocation8_spill] sm:$0xff]  ;;  %v3890_v47 = vand.u32 4294901760, %v3885_v63 }
  0x66   :  { %v1303_v7 = vand.u32 4294901760, %v1302_v43  ;;  %3884 = vst [vmem:[#allocation32_spill] sm:$0xff] %v3258_v20  ;;  %v210_v24 = vsub.f32 %v3250_v28, %v3258_v20  ;;  %v396_v43 = vand.u32 4294901760, %v395_v6  ;;  %v408_v45 = vand.u32 4294901760, %v407_v51 }
  0x67   :  { %v2280_v16 = vpack.c.bf16 %v2744_v26, %v3886_v4  ;;  %v2284_v6 = vpack.c.bf16 %v2775_v50, %v2773_v49  ;;  %v2478_v51 = vpack.c.bf16 %v3054_v62, %v3045_v15  ;;  %v3891_v39 = vand.u32 4294901760, %v2954_v33 }
  0x68   :  { %v2466_v37 = vpack.c.bf16 %v1310_v29, %v1303_v7  ;;  %v211_v41 = vand.u32 4294901760, %v210_v24  ;;  %v2276_v34 = vpack.c.bf16 %v408_v45, %v396_v43  ;;  %v2474_v7 = vpack.c.bf16 %v3013_v46, %v3008_v8 }
  0x69   :  { %v2286_v29 = vpack.c.bf16 %v2785_v55, %v2783_v54  ;;  %v2288_v24 = vpack.c.bf16 %v2807_v13, %v2798_v2  ;;  %v2290_v43 = vpack.c.bf16 %v2814_v27, %v2811_v19  ;;  %v2482_v45 = vpack.c.bf16 %v3088_v22, %v3080_v61 }
  0x6a   :  { %2467 = vmatprep.subr.bf16.mxu1 %v2466_v37  ;;  %212 = vmatmul.mubr.f32.gmra.mrb[6].mxu0 %v211_v41  ;;  %v3303_v20 = vpack.c.bf16 %v3891_v39, %v3890_v47  ;;  %v3892_v28 = vand.u32 4294901760, %v3886_v4  ;;  %v3893_v30 = vand.u32 4294901760, %v2744_v26  ;;  %v3896_v33 = vand.u32 4294901760, %v3008_v8 }
  0x6b   :  { %2022 = vmatmul.mubr.f32.gmra.mrb[2].mxu1 %v211_v41  ;;  %2277 = vmatpush1.bf16.msra.mxu0 %v2276_v34  ;;  %v3888_v41 = vand.u32 4294901760, %v2728_v17  ;;  %v3889_v34 = vand.u32 4294901760, %v2730_v18  ;;  %v3894_v17 = vand.u32 4294901760, %v2749_v31  ;;  %v3895_v18 = vand.u32 4294901760, %v2760_v42 }
  0x6c   :  { %2469 = vmatpush3.bf16.msra.mxu1 %v2466_v37  ;;  %442 = vmatprep.mubr.f32.mxu0 %v3863_v12  ;;  %v3887_v37 = vld [vmem:[#allocation40_spill] sm:$0xff]  ;;  %v3311_v58 = vpack.c.bf16 %v3893_v30, %v3892_v28  ;;  %v3897_v39 = vand.u32 4294901760, %v3013_v46  ;;  %v3898_v63 = vand.u32 4294901760, %v2773_v49  ;;  %v3899_v26 = vand.u32 4294901760, %v2775_v50 }
  0x6d   :  { %2279 = vmatprep.subr.bf16.mxu0 %v2278_v48  ;;  %2056 = vmatprep.mubr.f32.mxu1 %v3887_v37  ;;  %v3297_v48 = vpack.c.bf16 %v3889_v34, %v3888_v41  ;;  %v3317_v41 = vpack.c.bf16 %v3895_v18, %v3894_v17  ;;  %v3900_v31 = vand.u32 4294901760, %v2783_v54  ;;  %v3901_v42 = vand.u32 4294901760, %v2785_v55 }
  0x6e   :  { %2471 = vmatprep.subr.bf16.mxu1 %v2470_v60  ;;  %444 = vmatmul.mubr.f32.vlgmr.msra.gmra.mrb[0].mxu0 %v3887_v37  ;;  %v3323_v47 = vpack.c.bf16 %v3897_v39, %v3896_v33  ;;  %v3329_v28 = vpack.c.bf16 %v3899_v26, %v3898_v63  ;;  %v3902_v8 = vand.u32 4294901760, %v3045_v15  ;;  %v3903_v46 = vand.u32 4294901760, %v3054_v62 }
  0x6f   :  { %2057 = vmatmul.mubr.f32.vlgmr.msra.gmra.mrb[0].mxu1 %v2973_v23  ;;  %2281 = vmatpush1.bf16.msra.mxu0 %v2280_v16  ;;  %v3335_v30 = vpack.c.bf16 %v3901_v42, %v3900_v31  ;;  %v3904_v49 = vand.u32 4294901760, %v2798_v2  ;;  %v3905_v50 = vand.u32 4294901760, %v2807_v13  ;;  %v3906_v54 = vand.u32 4294901760, %v2811_v19 }
  0x70   :  { %2473 = vmatpush3.bf16.msra.mxu1 %v2470_v60  ;;  %v3341_v4 = vpack.c.bf16 %v3903_v46, %v3902_v8  ;;  %2283 = vmatprep.subr.bf16.mxu0 %v2282_v14  ;;  %v3907_v55 = vand.u32 4294901760, %v2814_v27  ;;  %v3908_v15 = vand.u32 4294901760, %v3080_v61  ;;  %v3909_v62 = vand.u32 4294901760, %v3088_v22 }
  0x71   :  { %2475 = vmatprep.subr.bf16.mxu1 %v2474_v7  ;;  %v3347_v60 = vpack.c.bf16 %v3905_v50, %v3904_v49  ;;  %449 = vmatprep.mubr.f32.mxu0 %v3863_v12  ;;  %v3910_v2 = vand.u32 4294901760, %v2822_v35  ;;  %v3911_v13 = vand.u32 4294901760, %v2831_v57  ;;  %v3912_v19 = vand.u32 4294901760, %v2840_v56  ;;  %v3922_v50 = vld [vmem:[#allocation25_spill] sm:$0xff] }
  0x72   :  { %v3353_v16 = vpack.c.bf16 %v3907_v55, %v3906_v54  ;;  %v3359_v34 = vpack.c.bf16 %v3909_v62, %v3908_v15  ;;  %2059 = vmatprep.mubr.f32.mxu1 %v3196_v11  ;;  %v3913_v27 = vand.u32 4294901760, %v2842_v44  ;;  %v3914_v61 = vand.u32 4294901760, %v3114_v5  ;;  %451 = vmatmul.mubr.f32.gmra.mrb[2].mxu0 %v2973_v23  ;;  %v3924_v55 = vld [vmem:[#allocation27_spill] sm:$0xff] }
  0x73   :  { %v3367_v14 = vpack.c.bf16 %v3911_v13, %v3910_v2  ;;  %v3915_v22 = vand.u32 4294901760, %v3122_v52  ;;  %2060 = vmatmul.mubr.f32.gmra.mrb[2].mxu1 %v3243_v21  ;;  %v3916_v33 = vand.u32 4294901760, %v2852_v32  ;;  %v3917_v39 = vand.u32 4294901760, %v2854_v10  ;;  %2285 = vmatpush1.bf16.msra.mxu0 %v2284_v6  ;;  %v3926_v2 = vld [vmem:[#allocation29_spill] sm:$0xff]  ;;  %v3932_v6 = vld [vmem:[#allocation34_spill] sm:$0xff] }
  0x74   :  { %v3373_v17 = vpack.c.bf16 %v3913_v27, %v3912_v19  ;;  %v3918_v26 = vand.u32 4294901760, %v2863_v38  ;;  %v3919_v31 = vand.u32 4294901760, %v2870_v36  ;;  %v3920_v8 = vand.u32 4294901760, %v3145_v3  ;;  %2477 = vmatpush3.bf16.msra.mxu1 %v2474_v7  ;;  %2287 = vmatprep.subr.bf16.mxu0 %v2286_v29  ;;  %v3941_v29 = vld [vmem:[#allocation44_spill] sm:$0xff] }
  0x75   :  { %v3379_v18 = vpack.c.bf16 %v3915_v22, %v3914_v61  ;;  %v3387_v63 = vpack.c.bf16 %v3917_v39, %v3916_v33  ;;  %v3921_v46 = vand.u32 4294901760, %v3157_v59  ;;  %v3923_v54 = vand.u32 4294901760, %v3922_v50  ;;  %2479 = vmatprep.subr.bf16.mxu1 %v2478_v51  ;;  %456 = vmatprep.mubr.f32.mxu0 %v3863_v12 }
  0x76   :  { %v3393_v42 = vpack.c.bf16 %v3919_v31, %v3918_v26  ;;  %v3925_v15 = vand.u32 4294901760, %v3924_v55  ;;  %v3927_v13 = vand.u32 4294901760, %v3926_v2  ;;  %v3928_v19 = vand.u32 4294901760, %v3873_v9  ;;  %v3935_v31 = vld [vmem:[#allocation36_spill] sm:$0xff]  ;;  %2094 = vmatprep.mubr.f32.mxu1 %v3941_v29  ;;  %458 = vmatmul.mubr.f32.gmra.mrb[4].mxu0 %v3196_v11 }
  0x77   :  { %v3399_v49 = vpack.c.bf16 %v3921_v46, %v3920_v8  ;;  %v3929_v61 = vand.u32 4294901760, %v3182_v1  ;;  %v3930_v22 = vand.u32 4294901760, %v3194_v53  ;;  %v3931_v7 = vand.u32 4294901760, %v3878_v40  ;;  %v3937_v46 = vld [vmem:[#allocation37_spill] sm:$0xff]  ;;  %2289 = vmatpush1.bf16.msra.mxu0 %v2288_v24  ;;  %463 = vmatprep.mubr.f32.mxu0 %v3863_v12 }
  0x78   :  { %v3405_v62 = vpack.c.bf16 %v3925_v15, %v3923_v54  ;;  %v3411_v27 = vpack.c.bf16 %v3928_v19, %v3927_v13  ;;  %v3933_v39 = vand.u32 4294901760, %v3932_v6  ;;  %v3936_v8 = vand.u32 4294901760, %v3935_v31  ;;  %2481 = vmatpush3.bf16.msra.mxu1 %v2478_v51  ;;  %2291 = vmatprep.subr.bf16.mxu0 %v2290_v43  ;;  %v3955_v51 = vld [vmem:[#allocation12_spill] sm:$0xff]  ;;  %v3956_v24 = vld [vmem:[#allocation13_spill] sm:$0xff]  ;;  %v3957_v43 = vld [vmem:[#allocation46_spill] sm:$0xff] }
  0x79   :  { %v3417_v33 = vpack.c.bf16 %v3930_v22, %v3929_v61  ;;  %v3938_v54 = vand.u32 4294901760, %v3937_v46  ;;  %v3939_v13 = vand.u32 4294901760, %v3230_v25  ;;  %v3940_v19 = vand.u32 4294901760, %v3240_v0  ;;  %v3942_v22 = vld [vmem:[#allocation39_spill] sm:$0xff]  ;;  %2483 = vmatprep.subr.bf16.mxu1 %v2482_v45 }
  0x7a   :  { %v3423_v26 = vpack.c.bf16 %v3933_v39, %v3931_v7  ;;  %v3943_v23 = vand.u32 4294901760, %v3942_v22  ;;  %v3944_v7 = vld [vmem:[#allocation43_spill] sm:$0xff]  ;;  %465 = vmatmul.mubr.f32.gmra.mrb[6].mxu0 %v3243_v21 }
  0x7b   :  { %v3429_v15 = vpack.c.bf16 %v3938_v54, %v3936_v8  ;;  %v3435_v61 = vpack.c.bf16 %v3940_v19, %v3939_v13  ;;  %v3945_v39 = vand.u32 4294901760, %v3944_v7  ;;  %v2292_v8 = vpack.c.bf16 %v2831_v57, %v2822_v35  ;;  %599 = vmatprep.mubr.f32.mxu0 %v3863_v12  ;;  %v3965_v19 = vld [vmem:[#allocation23_spill] sm:$0xff] }
  0x7c   :  { %3934 = vst [vmem:[#allocation41_spill] sm:$0xff] %v3423_v26  ;;  %v2294_v54 = vpack.c.bf16 %v2842_v44, %v2840_v56  ;;  %v2486_v13 = vpack.c.bf16 %v3122_v52, %v3114_v5  ;;  %2485 = vmatpush3.bf16.msra.mxu1 %v2482_v45  ;;  %v2298_v35 = vpack.c.bf16 %v2870_v36, %v2863_v38  ;;  %v3946_v52 = vld [vmem:[#allocation5_spill] sm:$0xff]  ;;  %v3958_v45 = vld [vmem:[#allocation14_spill] sm:$0xff] }
  0x7d   :  { %v3443_v26 = vpack.c.bf16 %v3945_v39, %v3943_v23  ;;  %2293 = vmatpush1.bf16.msra.mxu0 %v2292_v8  ;;  %v2296_v23 = vpack.c.bf16 %v2854_v10, %v2852_v32  ;;  %v2490_v44 = vpack.c.bf16 %v3157_v59, %v3145_v3  ;;  %v2300_v56 = vpack.c.bf16 %v3924_v55, %v3922_v50  ;;  %v3949_v3 = vld [vmem:[#allocation7_spill] sm:$0xff]  ;;  %v3950_v59 = vld [vmem:[#allocation9_spill] sm:$0xff]  ;;  %v3960_v55 = vld [vmem:[#allocation16_spill] sm:$0xff] }
  0x7e   :  { %2295 = vmatprep.subr.bf16.mxu0 %v2294_v54  ;;  %2487 = vmatprep.subr.bf16.mxu1 %v2486_v13  ;;  %v2302_v10 = vpack.c.bf16 %v3873_v9, %v3926_v2  ;;  %v2494_v32 = vpack.c.bf16 %v3194_v53, %v3182_v1  ;;  %v2304_v38 = vpack.c.bf16 %v3932_v6, %v3878_v40  ;;  %v3947_v40 = vld [vmem:[#allocation6_spill] sm:$0xff]  ;;  %v3948_v1 = vld [vmem:[#allocation47_spill] sm:$0xff]  ;;  %v3961_v2 = vld [vmem:[#allocation17_spill] sm:$0xff] }
  0x7f   :  { %v2306_v57 = vpack.c.bf16 %v3937_v46, %v3935_v31  ;;  %v2498_v36 = vpack.c.bf16 %v3240_v0, %v3230_v25  ;;  %v2308_v5 = vpack.c.bf16 %v3944_v7, %v3942_v22  ;;  %v3951_v25 = vld [vmem:[#allocation10_spill] sm:$0xff]  ;;  %v3954_v0 = vld [vmem:[#allocation11_spill] sm:$0xff]  ;;  %v3964_v46 = vld [vmem:[#allocation20_spill] sm:$0xff] }
  0x80   :  { %2489 = vmatpush3.bf16.msra.mxu1 %v2486_v13  ;;  %v3952_v9 = vld [vmem:[#allocation30_spill] sm:$0xff]  ;;  %v3959_v50 = vld [vmem:[#allocation15_spill] sm:$0xff]  ;;  %v3968_v7 = vld [vmem:[#allocation28_spill] sm:$0xff] }
  0x81   :  { %2297 = vmatpush1.bf16.msra.mxu0 %v2296_v23  ;;  %2491 = vmatprep.subr.bf16.mxu1 %v2490_v44  ;;  %v3953_v53 = vld [vmem:[#allocation22_spill] sm:$0xff]  ;;  %v3963_v31 = vld [vmem:[#allocation19_spill] sm:$0xff]  ;;  %v3970_v8 = vld [vmem:[#allocation33_spill] sm:$0xff] }
  0x82   :  { %2299 = vmatprep.subr.bf16.mxu0 %v2298_v35  ;;  %v3962_v6 = vld [vmem:[#allocation18_spill] sm:$0xff]  ;;  %v3969_v39 = vld [vmem:[#allocation31_spill] sm:$0xff]  ;;  %v3974_v35 = vld [vmem:[#allocation48_spill] sm:$0xff] }
  0x83   :  { %v3967_v22 = vld [vmem:[#allocation26_spill] sm:$0xff]  ;;  %v3971_v54 = vld [vmem:[#allocation35_spill] sm:$0xff] }
  0x84   :  { %2493 = vmatpush3.bf16.msra.mxu1 %v2490_v44  ;;  %v3972_v13 = vld [vmem:[#allocation38_spill] sm:$0xff]  ;;  %v3975_v44 = vld [vmem:[#allocation21_spill] sm:$0xff] }
  0x85   :  { %2301 = vmatpush1.bf16.msra.mxu0 %v2300_v56  ;;  %2495 = vmatprep.subr.bf16.mxu1 %v2494_v32  ;;  %v3973_v23 = vld [vmem:[#allocation42_spill] sm:$0xff] }
  0x86   :  { %2303 = vmatprep.subr.bf16.mxu0 %v2302_v10 }
  0x88   :  { %2497 = vmatpush3.bf16.msra.mxu1 %v2494_v32 }
  0x89   :  { %2305 = vmatpush1.bf16.msra.mxu0 %v2304_v38  ;;  %2499 = vmatprep.subr.bf16.mxu1 %v2498_v36 }
  0x8a   :  { %2307 = vmatprep.subr.bf16.mxu0 %v2306_v57 }
  0x8c   :  { %2501 = vmatpush3.bf16.msra.mxu1 %v2498_v36 }
  0x8d   :  { %2309 = vmatpush1.bf16.msra.mxu0 %v2308_v5  ;;  %2503 = vmatprep.subr.bf16.mxu1 %v3947_v40 }
  0x8e   :  { %2311 = vmatprep.subr.bf16.mxu0 %v3946_v52 }
  0x8f   :  { %2095 = vmatmul.mubr.f32.vlgmr.msra.gmra.mrb[0].mxu1 %v3948_v1 }
  0x90   :  { %602 = vmatmul.mubr.f32.vlgmr.msra.gmra.mrb[0].mxu0 %v3941_v29  ;;  %2505 = vmatpush3.bf16.msra.mxu1 %v3947_v40  ;;  %v3966_v29 = vld [vmem:[#allocation24_spill] sm:$0xff] }
  0x91   :  { %2313 = vmatpush1.bf16.msra.mxu0 %v3949_v3  ;;  %2507 = vmatprep.subr.bf16.mxu1 %v3951_v25 }
  0x92   :  { %2315 = vmatprep.subr.bf16.mxu0 %v3950_v59  ;;  %607 = vmatprep.mubr.f32.mxu0 %v3863_v12 }
  0x93   :  { %2097 = vmatprep.mubr.f32.mxu1 %v3952_v9 }
  0x94   :  { %610 = vmatmul.mubr.f32.gmra.mrb[2].mxu0 %v3948_v1  ;;  %2098 = vmatmul.mubr.f32.gmra.mrb[2].mxu1 %v3953_v53 }
  0x95   :  { %2317 = vmatpush1.bf16.msra.mxu0 %v3954_v0  ;;  %2509 = vmatpush3.bf16.msra.mxu1 %v3951_v25 }
  0x96   :  { %2319 = vmatprep.subr.bf16.mxu0 %v3955_v51  ;;  %2511 = vmatprep.subr.bf16.mxu1 %v3956_v24 }
  0x97   :  { %615 = vmatprep.mubr.f32.mxu0 %v3863_v12  ;;  %2132 = vmatprep.mubr.f32.mxu1 %v3957_v43 }
  0x98   :  { %618 = vmatmul.mubr.f32.gmra.mrb[4].mxu0 %v3952_v9 }
  0x99   :  { %2321 = vmatpush1.bf16.msra.mxu0 %v3958_v45  ;;  %2513 = vmatpush3.bf16.msra.mxu1 %v3956_v24 }
  0x9a   :  { %2323 = vmatprep.subr.bf16.mxu0 %v3959_v50  ;;  %2515 = vmatprep.subr.bf16.mxu1 %v3960_v55 }
  0x9b   :  { %623 = vmatprep.mubr.f32.mxu0 %v3863_v12 }
  0x9c   :  { %626 = vmatmul.mubr.f32.gmra.mrb[6].mxu0 %v3953_v53 }
  0x9d   :  { %2325 = vmatpush1.bf16.msra.mxu0 %v3961_v2  ;;  %2517 = vmatpush3.bf16.msra.mxu1 %v3960_v55 }
  0x9e   :  { %2327 = vmatprep.subr.bf16.mxu0 %v3962_v6  ;;  %2519 = vmatprep.subr.bf16.mxu1 %v3963_v31 }
  0x9f   :  { %728 = vmatprep.mubr.f32.mxu0 %v3863_v12 }
  0xa1   :  { %2329 = vmatpush1.bf16.msra.mxu0 %v3964_v46  ;;  %2521 = vmatpush3.bf16.msra.mxu1 %v3963_v31 }
  0xa2   :  { %2331 = vmatprep.subr.bf16.mxu0 %v3965_v19  ;;  %2523 = vmatprep.subr.bf16.mxu1 %v3966_v29 }
  0xa5   :  { %2333 = vmatpush1.bf16.msra.mxu0 %v3967_v22  ;;  %2525 = vmatpush3.bf16.msra.mxu1 %v3966_v29 }
  0xa6   :  { %2335 = vmatprep.subr.bf16.mxu0 %v3968_v7  ;;  %2527 = vmatprep.subr.bf16.mxu1 %v3969_v39 }
  0xa9   :  { %2337 = vmatpush1.bf16.msra.mxu0 %v3970_v8  ;;  %2529 = vmatpush3.bf16.msra.mxu1 %v3969_v39 }
  0xaa   :  { %2339 = vmatprep.subr.bf16.mxu0 %v3971_v54  ;;  %2531 = vmatprep.subr.bf16.mxu1 %v3972_v13 }
  0xad   :  { %2341 = vmatpush1.bf16.msra.mxu0 %v3973_v23  ;;  %2533 = vmatpush3.bf16.msra.mxu1 %v3972_v13 }
  0xae   :  { %2343 = vmatprep.subr.bf16.mxu0 %v3297_v48  ;;  %2535 = vmatprep.subr.bf16.mxu1 %v3303_v20  ;;  %v3976_v48 = vld [vmem:[#allocation32_spill] sm:$0xff] }
  0xb0   :  { %732 = vmatmul.mubr.f32.vlgmr.msra.gmra.mrb[0].mxu0 %v3957_v43  ;;  %2133 = vmatmul.mubr.f32.vlgmr.msra.gmra.mrb[0].mxu1 %v3974_v35 }
  0xb1   :  { %2345 = vmatpush1.bf16.msra.mxu0 %v3311_v58  ;;  %2537 = vmatpush3.bf16.msra.mxu1 %v3303_v20  ;;  %v3977_v58 = vld [vmem:[#allocation41_spill] sm:$0xff] }
  0xb2   :  { %2347 = vmatprep.subr.bf16.mxu0 %v3317_v41  ;;  %2539 = vmatprep.subr.bf16.mxu1 %v3323_v47  ;;  %v3978_v20 = vld [vmem:[#allocation45_spill] sm:$0xff] }
  0xb3   :  { %737 = vmatprep.mubr.f32.mxu0 %v3863_v12  ;;  %2135 = vmatprep.mubr.f32.mxu1 %v3975_v44 }
  0xb4   :  { %741 = vmatmul.mubr.f32.gmra.mrb[2].mxu0 %v3974_v35  ;;  %2136 = vmatmul.mubr.f32.gmra.mrb[2].mxu1 %v3976_v48 }
  0xb5   :  { %2349 = vmatpush1.bf16.msra.mxu0 %v3329_v28  ;;  %2541 = vmatpush3.bf16.msra.mxu1 %v3323_v47 }
  0xb6   :  { %2351 = vmatprep.subr.bf16.mxu0 %v3335_v30  ;;  %2543 = vmatprep.subr.bf16.mxu1 %v3341_v4 }
  0xb7   :  { %746 = vmatprep.mubr.f32.mxu0 %v3863_v12  ;;  %2170 = vmatprep.mubr.f32.mxu1 %v3887_v37 }
  0xb8   :  { %750 = vmatmul.mubr.f32.gmra.mrb[4].mxu0 %v3975_v44 }
  0xb9   :  { %2353 = vmatpush1.bf16.msra.mxu0 %v3347_v60  ;;  %2545 = vmatpush3.bf16.msra.mxu1 %v3341_v4 }
  0xba   :  { %2355 = vmatprep.subr.bf16.mxu0 %v3353_v16  ;;  %2547 = vmatprep.subr.bf16.mxu1 %v3359_v34 }
  0xbb   :  { %755 = vmatprep.mubr.f32.mxu0 %v3863_v12 }
  0xbc   :  { %759 = vmatmul.mubr.f32.gmra.mrb[6].mxu0 %v3976_v48 }
  0xbd   :  { %2357 = vmatpush1.bf16.msra.mxu0 %v3367_v14  ;;  %2549 = vmatpush3.bf16.msra.mxu1 %v3359_v34 }
  0xbe   :  { %2359 = vmatprep.subr.bf16.mxu0 %v3373_v17  ;;  %2551 = vmatprep.subr.bf16.mxu1 %v3379_v18 }
  0xbf   :  { %925 = vmatprep.mubr.f32.mxu0 %v3863_v12 }
  0xc1   :  { %2361 = vmatpush1.bf16.msra.mxu0 %v3387_v63  ;;  %2553 = vmatpush3.bf16.msra.mxu1 %v3379_v18 }
  0xc2   :  { %2363 = vmatprep.subr.bf16.mxu0 %v3393_v42  ;;  %2555 = vmatprep.subr.bf16.mxu1 %v3399_v49 }
  0xc5   :  { %2365 = vmatpush1.bf16.msra.mxu0 %v3405_v62  ;;  %2557 = vmatpush3.bf16.msra.mxu1 %v3399_v49 }
  0xc6   :  { %2367 = vmatprep.subr.bf16.mxu0 %v3411_v27  ;;  %2559 = vmatprep.subr.bf16.mxu1 %v3417_v33 }
  0xc9   :  { %2369 = vmatpush1.bf16.msra.mxu0 %v3977_v58  ;;  %2561 = vmatpush3.bf16.msra.mxu1 %v3417_v33 }
  0xca   :  { %2371 = vmatprep.subr.bf16.mxu0 %v3429_v15  ;;  %2563 = vmatprep.subr.bf16.mxu1 %v3435_v61 }
  0xcd   :  { %2373 = vmatpush1.bf16.msra.mxu0 %v3443_v26  ;;  %2565 = vmatpush3.bf16.msra.mxu1 %v3435_v61 }
  0xce   :  { %2375 = vmatprep.subr.bf16.mxu0 %v3946_v52  ;;  %2567 = vmatprep.subr.bf16.mxu1 %v3947_v40 }
  0xd0   :  { %927 = vmatmul.mubr.f32.vlgmr.msra.gmra.mrb[0].mxu0 %v3887_v37  ;;  %2171 = vmatmul.mubr.f32.vlgmr.msra.gmra.mrb[0].mxu1 %v3978_v20 }
  0xd1   :  { %2377 = vmatpush1.bf16.msra.mxu0 %v3949_v3  ;;  %2569 = vmatpush3.bf16.msra.mxu1 %v3947_v40 }
  0xd2   :  { %2379 = vmatprep.subr.bf16.mxu0 %v3950_v59  ;;  %2571 = vmatprep.subr.bf16.mxu1 %v3951_v25 }
  0xd3   :  { %932 = vmatprep.mubr.f32.mxu0 %v3863_v12  ;;  %2173 = vmatprep.mubr.f32.mxu1 %v3196_v11 }
  0xd4   :  { %934 = vmatmul.mubr.f32.gmra.mrb[2].mxu0 %v3978_v20  ;;  %2174 = vmatmul.mubr.f32.gmra.mrb[2].mxu1 %v3243_v21 }
  0xd5   :  { %2381 = vmatpush1.bf16.msra.mxu0 %v3954_v0  ;;  %2573 = vmatpush3.bf16.msra.mxu1 %v3951_v25 }
  0xd6   :  { %2383 = vmatprep.subr.bf16.mxu0 %v3955_v51  ;;  %2575 = vmatprep.subr.bf16.mxu1 %v3956_v24 }
  0xd7   :  { %939 = vmatprep.mubr.f32.mxu0 %v3863_v12  ;;  %2208 = vmatprep.mubr.f32.mxu1 %v3887_v37 }
  0xd8   :  { %941 = vmatmul.mubr.f32.gmra.mrb[4].mxu0 %v3196_v11 }
  0xd9   :  { %2385 = vmatpush1.bf16.msra.mxu0 %v3958_v45  ;;  %2577 = vmatpush3.bf16.msra.mxu1 %v3956_v24 }
  0xda   :  { %2387 = vmatprep.subr.bf16.mxu0 %v3959_v50  ;;  %2579 = vmatprep.subr.bf16.mxu1 %v3960_v55 }
  0xdb   :  { %946 = vmatprep.mubr.f32.mxu0 %v3863_v12 }
  0xdc   :  { %948 = vmatmul.mubr.f32.gmra.mrb[6].mxu0 %v3243_v21 }
  0xdd   :  { %2389 = vmatpush1.bf16.msra.mxu0 %v3961_v2  ;;  %2581 = vmatpush3.bf16.msra.mxu1 %v3960_v55 }
  0xde   :  { %2391 = vmatprep.subr.bf16.mxu0 %v3962_v6  ;;  %2583 = vmatprep.subr.bf16.mxu1 %v3963_v31 }
  0xdf   :  { %1050 = vmatprep.mubr.f32.mxu0 %v3863_v12 }
  0xe1   :  { %2393 = vmatpush1.bf16.msra.mxu0 %v3964_v46  ;;  %2585 = vmatpush3.bf16.msra.mxu1 %v3963_v31 }
  0xe2   :  { %2395 = vmatprep.subr.bf16.mxu0 %v3965_v19  ;;  %2587 = vmatprep.subr.bf16.mxu1 %v3966_v29 }
  0xe5   :  { %2397 = vmatpush1.bf16.msra.mxu0 %v3967_v22  ;;  %2589 = vmatpush3.bf16.msra.mxu1 %v3966_v29 }
  0xe6   :  { %2399 = vmatprep.subr.bf16.mxu0 %v3968_v7  ;;  %2591 = vmatprep.subr.bf16.mxu1 %v3969_v39 }
  0xe9   :  { %2401 = vmatpush1.bf16.msra.mxu0 %v3970_v8  ;;  %2593 = vmatpush3.bf16.msra.mxu1 %v3969_v39 }
  0xea   :  { %2403 = vmatprep.subr.bf16.mxu0 %v3971_v54  ;;  %2595 = vmatprep.subr.bf16.mxu1 %v3972_v13 }
  0xed   :  { %2405 = vmatpush1.bf16.msra.mxu0 %v3973_v23  ;;  %2597 = vmatpush3.bf16.msra.mxu1 %v3972_v13 }
  0xf0   :  { %1052 = vmatmul.mubr.f32.vlgmr.msra.gmra.mrb[0].mxu0 %v3887_v37  ;;  %2209 = vmatmul.mubr.f32.vlgmr.msra.gmra.mrb[0].mxu1 %v3978_v20 }
  0xf1   :  { %1057 = vmatprep.mubr.f32.mxu0 %v3863_v12  ;;  %2211 = vmatprep.mubr.f32.mxu1 %v3196_v11 }
  0xf4   :  { %1059 = vmatmul.mubr.f32.gmra.mrb[2].mxu0 %v3978_v20  ;;  %2212 = vmatmul.mubr.f32.gmra.mrb[2].mxu1 %v3243_v21 }
  0xf5   :  { %1064 = vmatprep.mubr.f32.mxu0 %v3863_v12 }
  0xf8   :  { %1066 = vmatmul.mubr.f32.gmra.mrb[4].mxu0 %v3196_v11 }
  0xf9   :  { %1071 = vmatprep.mubr.f32.mxu0 %v3863_v12 }
  0xfc   :  { %1073 = vmatmul.mubr.f32.gmra.mrb[6].mxu0 %v3243_v21 }
 0x1c3   :  { %v1053_v41 = vpop.f32.mrb[0].mxu0  ;;  %v2210_v37 = vpop.f32.mrb[0].mxu1 }
 0x1c4   :  { %1849 = vst [vmem:[%s3655_s2] sm:$0xff] %v1053_v41  ;;  %1854 = vst [vmem:[%s3655_s2 + $0x28] sm:$0xff] %v2210_v37  ;;  %v1055_v47 = vpop.f32.mrb[1].mxu0  ;;  %v1827_v28 = vpop.f32.mrb[1].mxu1 }
 0x1c5   :  { %1850 = vst [vmem:[%s3655_s2 + $0x8] sm:$0xff] %v1055_v47  ;;  %1851 = vst [vmem:[%s3655_s2 + $0x10] sm:$0xff] %v1827_v28 }
 0x1c7   :  { %v1060_v21 = vpop.f32.mrb[2].mxu0  ;;  %v2213_v12 = vpop.f32.mrb[2].mxu1 }
 0x1c8   :  { %1852 = vst [vmem:[%s3655_s2 + $0x18] sm:$0xff] %v1060_v21  ;;  %1860 = vst [vmem:[%s3655_s2 + $0x58] sm:$0xff] %v2213_v12  ;;  %v1062_v11 = vpop.f32.mrb[3].mxu0  ;;  %v1839_v30 = vpop.f32.mrb[3].mxu1 }
 0x1c9   :  { %1853 = vst [vmem:[%s3655_s2 + $0x20] sm:$0xff] %v1062_v11  ;;  %1857 = vst [vmem:[%s3655_s2 + $0x40] sm:$0xff] %v1839_v30 }
 0x1cb   :  { %v1067_v4 = vpop.f32.mrb[4].mxu0 }
 0x1cc   :  { %1855 = vst [vmem:[%s3655_s2 + $0x30] sm:$0xff] %v1067_v4  ;;  %v1069_v60 = vpop.f32.mrb[5].mxu0 }
 0x1cd   :  { %1856 = vst [vmem:[%s3655_s2 + $0x38] sm:$0xff] %v1069_v60 }
 0x1cf   :  { %v1074_v16 = vpop.f32.mrb[6].mxu0 }
 0x1d0   :  { %1858 = vst [vmem:[%s3655_s2 + $0x48] sm:$0xff] %v1074_v16  ;;  %v1076_v34 = vpop.f32.mrb[7].mxu0 }
 0x1d1   :  { %1859 = vst [vmem:[%s3655_s2 + $0x50] sm:$0xff] %v1076_v34 }
 0x1d2   :  { %1865 = vsyncpa [#allocation3], 1 }

</bundles_post_ra>
